<compile_context>
chip_gen: v6e
topology: v6e:2x2x1
jax: 0.10.0
libtpu: 0.0.40
codegen_flags: <defaults>
</compile_context>

<pallas_src>
import functools

import jax
import jax.numpy as jnp
from jax.experimental import pallas as pl
from jax.experimental.pallas import tpu as pltpu


_MIN_LANES = 128                       # TPU vreg lane width
_TARGET_BLOCK_BYTES = 4 * 1024 * 1024  # ~4 MiB per block (per buffer)
_VMEM_LIMIT_BYTES = 32 << 20           # safe on v5e/v6e (128 MiB) and v7x (64 MiB)


def _glu_kernel(x_ref, o_ref, *, compute_dtype):
    # SiLU via the tanh identity: sigmoid(x) = 0.5 * (1 + tanh(0.5 * x)).
    # One transcendental per element (EUP), everything else on the VPU.
    x = x_ref[...].astype(compute_dtype)
    half = jnp.asarray(0.5, compute_dtype)
    one = jnp.asarray(1.0, compute_dtype)
    y = x * (half * (one + jnp.tanh(x * half)))
    o_ref[...] = y.astype(o_ref.dtype)


def _silu_ref(x, out_dtype):
    """Plain-JAX fallback for tiny tensors / unaligned tails."""
    xf = x.astype(jnp.float32)
    return (xf * jax.nn.sigmoid(xf)).astype(out_dtype)


def _choose_lanes(total: int) -> int:
    """Widest lane-dense last dim (multiple of 128) that divides `total`."""
    for lanes in (4096, 2048, 1024, 512, 256, 128):
        if total >= lanes and total % lanes == 0:
            return lanes
    return _MIN_LANES


def _native_bf16_compute_ok() -> bool:
    """bf16 VPU/EUP exist on v6e/v7x; v5e (and older) must upcast to f32."""
    try:
        kind = jax.devices()[0].device_kind.lower()
    except Exception:
        return False
    return ("v6" in kind) or ("v7" in kind)


def _compute_dtype_for(dtype) -> jnp.dtype:
    if dtype == jnp.bfloat16 and _native_bf16_compute_ok():
        return jnp.bfloat16
    return jnp.float32


def _pick_row_tile(rows: int, lanes: int, itemsize: int) -> int:
    # Dtype-aware sublane multiple: 8 rows for 4-byte, 16 for 2-byte, 32 for 1-byte.
    sub = max(8, 32 // max(1, itemsize))
    target_rows = max(1, _TARGET_BLOCK_BYTES // (lanes * itemsize))
    row_tile = max(sub, (target_rows // sub) * sub)

    if row_tile * 2 > rows:
        # Whole array fits in (roughly) one block: split into >= 2 blocks so
        # the "parallel" grid axis can shard across v7x's two TensorCores.
        half = (rows // 2) // sub * sub
        if half >= sub:
            row_tile = half
        else:
            row_tile = rows  # full extent — always a legal block shape
    return row_tile


def glu(x: jax.Array) -> jax.Array:
    """Custom GLU: x * sigmoid(x), same shape/dtype as input."""
    orig_shape = x.shape
    dtype = x.dtype
    total = x.size

    if total == 0:
        return x

    lanes = _choose_lanes(total)
    flat = x.reshape(-1)

    aligned = (total // lanes) * lanes
    tail = total - aligned

    if aligned == 0:
        # Tiny tensor (< 128 elements): not worth a kernel launch.
        return _silu_ref(flat, dtype).reshape(orig_shape)

    head = flat[:aligned] if tail else flat
    rows = aligned // lanes
    x2d = head.reshape(rows, lanes)

    itemsize = jnp.dtype(dtype).itemsize
    row_tile = _pick_row_tile(rows, lanes, itemsize)
    grid = (pl.cdiv(rows, row_tile),)
    compute_dtype = _compute_dtype_for(dtype)

    out2d = pl.pallas_call(
        functools.partial(_glu_kernel, compute_dtype=compute_dtype),
        out_shape=jax.ShapeDtypeStruct((rows, lanes), dtype),
        grid_spec=pltpu.PrefetchScalarGridSpec(
            num_scalar_prefetch=0,
            grid=grid,
            in_specs=[pl.BlockSpec((row_tile, lanes), lambda i: (i, 0))],
            out_specs=pl.BlockSpec((row_tile, lanes), lambda i: (i, 0)),
        ),
        compiler_params=pltpu.CompilerParams(
            dimension_semantics=("parallel",),
            vmem_limit_bytes=_VMEM_LIMIT_BYTES,
        ),
    )(x2d)

    out_head = out2d.reshape(-1)
    if tail:
        tail_out = _silu_ref(flat[aligned:], dtype)
        return jnp.concatenate([out_head, tail_out]).reshape(orig_shape)
    return out_head.reshape(orig_shape)


if __name__ == "__main__":
    key = jax.random.PRNGKey(0)

    # NCHW input consistent with a conv-style GAN layer.
    x = jax.random.normal(key, (2, 4, 16, 16), dtype=jnp.float32)
    y = glu(x)
    jax.block_until_ready(y)

    ref = x * jax.nn.sigmoid(x)
    assert y.shape == x.shape and y.dtype == x.dtype
    assert jnp.allclose(y, ref, atol=1e-5, rtol=1e-5)

    # Shape that is not lane-aligned (exercises the prefix + jnp-tail path).
    x2 = jax.random.normal(jax.random.PRNGKey(1), (3, 5, 17), dtype=jnp.float32)
    y2 = glu(x2)
    jax.block_until_ready(y2)
    assert jnp.allclose(y2, x2 * jax.nn.sigmoid(x2), atol=1e-5, rtol=1e-5)

    # bf16 path (native bf16 compute on v6e/v7x, f32 upcast elsewhere).
    x3 = jax.random.normal(jax.random.PRNGKey(2), (2, 8, 16, 16)).astype(jnp.bfloat16)
    y3 = glu(x3)
    jax.block_until_ready(y3)
    ref3 = (x3.astype(jnp.float32) * jax.nn.sigmoid(x3.astype(jnp.float32)))
    assert y3.dtype == jnp.bfloat16
    assert jnp.allclose(y3.astype(jnp.float32), ref3, atol=2e-2, rtol=2e-2)

    print("KERNEL_OK")
</pallas_src>

<mosaic_0001>
module attributes {stable_mosaic.version = 11 : i64} {
  func.func @_glu_kernel(%arg0: i32, %arg1: memref<1x2048xf32, #tpu.memory_space<vmem>>, %arg2: memref<1x2048xf32, #tpu.memory_space<vmem>>) attributes {dimension_semantics = [#tpu.dimension_semantics<parallel>], iteration_bounds = array<i64: 1>, scalar_prefetch = 0 : i64, scratch_operands = 0 : i64, tpu.core_type = #tpu.core_type<tc>, window_params = [{transform_indices = @transform_0, window_bounds = array<i64: 1, 2048>}, {transform_indices = @transform_1, window_bounds = array<i64: 1, 2048>}]} {
    %c0 = arith.constant 0 : index
    %c0_0 = arith.constant 0 : index
    %0 = vector.load %arg1[%c0, %c0_0] : memref<1x2048xf32, #tpu.memory_space<vmem>>, vector<1x2048xf32>
    %cst = arith.constant 5.000000e-01 : f32
    %1 = vector.broadcast %cst : f32 to vector<1x2048xf32>
    %2 = arith.mulf %0, %1 : vector<1x2048xf32>
    %3 = math.tanh %2 : vector<1x2048xf32>
    %cst_1 = arith.constant 1.000000e+00 : f32
    %4 = vector.broadcast %cst_1 : f32 to vector<1x2048xf32>
    %5 = arith.addf %4, %3 : vector<1x2048xf32>
    %cst_2 = arith.constant 5.000000e-01 : f32
    %6 = vector.broadcast %cst_2 : f32 to vector<1x2048xf32>
    %7 = arith.mulf %6, %5 : vector<1x2048xf32>
    %8 = arith.mulf %0, %7 : vector<1x2048xf32>
    %c0_3 = arith.constant 0 : index
    %c0_4 = arith.constant 0 : index
    %9 = vector.load %arg2[%c0_3, %c0_4] : memref<1x2048xf32, #tpu.memory_space<vmem>>, vector<1x2048xf32>
    tpu.vector_store %arg2[%c0_3, %c0_4], %8 {strides = array<i32>} : memref<1x2048xf32, #tpu.memory_space<vmem>>, vector<1x2048xf32>,
    return
  }
  func.func @transform_0(%arg0: i32) -> (i32, i32) {
    %c0_i32 = arith.constant 0 : i32
    %c0_i32_0 = arith.constant 0 : i32
    return %arg0, %c0_i32 : i32, i32
  }
  func.func @transform_1(%arg0: i32) -> (i32, i32) {
    %c0_i32 = arith.constant 0 : i32
    %c0_i32_0 = arith.constant 0 : i32
    return %arg0, %c0_i32 : i32, i32
  }
}

</mosaic_0001>

<bundles_post_ra>
// kernel: tpu_custom_call.1
= control target key start
LH: loop header
LB: loop body
LE: loop exit
PB: predicated region body
PF: predicated region fallthrough
CT: control target
= control target key end

     0   :  { %6 = vsyncpa [#allocation3], 0  ;;  %s118_s0 = inlined_call_operand.hbm [shape: f32[1,2048], index: 0, kind: input, shape index: {}]   ;;  %s119_s1 = inlined_call_operand.hbm [shape: f32[1,2048], index: 1, kind: output, shape index: {}]  }
   0x1   :  { %7 = vsyncpa [#allocation4], 0  ;;  %s100_s6 = smov [#allocation2]  }
   0x2   :  { %s14_s7 = sshll.u32 %s100_s6, 4  ;;  %s15_s7 = int_to_ptr.vmem [resolvable:$true] %s14_s7 }
   0x3   :  { %s64_s8 = scalar_lea.vmem %s15_s7, 256  ;;  %p69_p1 = scmp.lt.s32.totalorder %s15_s7, %s15_s7 }
   0x4   :  { %p65_p0 = scmp.ne.s32.totalorder %s15_s7, %s64_s8  ;;  %p70_p2 = scmp.lt.s32.totalorder %s64_s8, %s64_s8 }
   0x6   :  { %p71_p3 = por %p70_p2, %p69_p1 }
   0x8   :  { %p72_p4 = pnand %p71_p3, %p65_p0 }
   0xa   :  { %75 = shalt.err (!%p72_p4)
}
   0xb   :  { %17 = dma.hbm_to_vmem [thread:$0]  %s118_s0, 256, %s15_s7, [#allocation3]  }
   0xc   :  { %96 = dma.done.wait [#allocation3], 256  }
   0xd   :  { %97 = vsyncadd [#allocation3], 4294967040  ;;  %v21_v0 = vld [vmem:[#allocation2] sm:$0xff]  ;;  %v22_v1 = vld [vmem:[#allocation2 + $0x8] sm:$0xff]  ;;  %s101_s11 = smov [#allocation5]  }
   0xe   :  { %v23_v2 = vmul.f32 0.5, %v21_v0  ;;  %v24_v3 = vmul.f32 0.5, %v22_v1  ;;  %s41_s12 = sshll.u32 %s101_s11, 4  ;;  %s42_s12 = int_to_ptr.vmem [resolvable:$true] %s41_s12 }
   0xf   :  { %s76_s0 = scalar_lea.vmem %s42_s12, 256  ;;  %p81_p6 = scmp.lt.s32.totalorder %s42_s12, %s42_s12 }
  0x10   :  { %52 = vtanh.f32 %v23_v2  ;;  %p77_p5 = scmp.ne.s32.totalorder %s42_s12, %s76_s0  ;;  %p82_p7 = scmp.lt.s32.totalorder %s76_s0, %s76_s0 }
  0x11   :  { %54 = vtanh.f32 %v24_v3 }
  0x12   :  { %p83_p8 = por %p82_p7, %p81_p6 }
  0x14   :  { %p84_p9 = pnand %p83_p8, %p77_p5 }
  0x1d   :  { %v53_v4 = vpop.eup %52 }
  0x1e   :  { %v55_v5 = vpop.eup %54  ;;  %v27_v6 = vadd.f32 1.0, %v53_v4 }
  0x1f   :  { %v28_v7 = vadd.f32 1.0, %v55_v5 }
  0x20   :  { %v29_v8 = vmul.f32 0.5, %v27_v6 }
  0x21   :  { %v30_v9 = vmul.f32 0.5, %v28_v7 }
  0x22   :  { %v31_v10 = vmul.f32 %v29_v8, %v21_v0 }
  0x23   :  { %v32_v11 = vmul.f32 %v30_v9, %v22_v1 }
  0x24   :  { %33 = vst [vmem:[#allocation5] sm:$0xff] %v31_v10 }
  0x25   :  { %34 = vst [vmem:[#allocation5 + $0x8] sm:$0xff] %v32_v11 }
  0x26   :  { %87 = shalt.err (!%p84_p9)
}
  0x27   :  { %44 = dma.vmem_to_hbm [thread:$0]  %s42_s12, 256, %s119_s1, [#allocation4]  }
  0x28   :  { %98 = dma.done.wait [#allocation4], 256  }
  0x29   :  { %99 = vsyncadd [#allocation4], 4294967040 }
  0x2a   :  { %48 = vsyncpa [#allocation3], 1 }
  0x2b   :  { %49 = vsyncpa [#allocation4], 1 }

</bundles_post_ra>
